<compile_context>
chip_gen: v7x
topology: tpu7x:2x2x1
jax: 0.10.0
libtpu: 0.0.40
codegen_flags: <defaults>
</compile_context>

<pallas_src>
import jax
import jax.numpy as jnp
from jax.experimental import pallas as pl
from jax.experimental.pallas import tpu as pltpu

LANE = 128


def _round_up(x, m):
    return ((x + m - 1) // m) * m


# -----------------------------------------------------------------------------
# Kernel: one grid step = (batch block b, timestep t)
# -----------------------------------------------------------------------------
def tree_rnn_rollout_kernel(
    x_ref,      # (1, bb, D_in)  f32   observations for this (block, t)
    h0_ref,     # (bb, Hp)       f32   initial hidden state, lane-padded w/ zeros
    w_enc_ref,  # (D_in, Hp)     bf16  TreeEncoder (linear) weight, (in, out)
    b_enc_ref,  # (1, Hp)        f32
    w_g_ref,    # (2*Hp, 4*H)    bf16  fused GRU weight: rows [enc | h], cols [r|z|n_i|n_h]
    b_g_ref,    # (1, 4*H)       f32   biases: [b_ir+b_hr | b_iz+b_hz | b_in | b_hn]
    w_out_ref,  # (H, Ap)        bf16  action head weight
    b_out_ref,  # (1, Ap)        f32
    q_ref,      # out (1, bb, A) f32   per-step Q values (unpadded)
    h_out_ref,  # out (bb, H)    f32   final hidden state (unpadded)
    h_scratch,  # VMEM (bb, Hp)  f32   hidden state carried across the T axis
):
    H = h_out_ref.shape[-1]
    A = q_ref.shape[-1]
    t = pl.program_id(1)

    # Initialize the carried hidden state once per batch block (t is innermost).
    @pl.when(t == 0)
    def _():
        h_scratch[...] = h0_ref[...]

    x = x_ref[0]               # (bb, D_in)
    h = h_scratch[...]         # (bb, Hp) f32; lanes [H:Hp) are zero and inert

    # --- TreeEncoder (approximated as Linear) + ReLU --------------------------
    enc = jnp.dot(x.astype(jnp.bfloat16), w_enc_ref[...],
                  preferred_element_type=jnp.float32) + b_enc_ref[...]
    enc = jnp.maximum(enc, 0.0)                       # (bb, Hp), padded lanes 0

    # --- GRUCell: single fused MXU push ---------------------------------------
    # g = [enc | h] @ W  ->  [r_pre | z_pre | n_input_pre | n_hidden_pre]
    xh = jnp.concatenate(
        [enc.astype(jnp.bfloat16), h.astype(jnp.bfloat16)], axis=-1)  # (bb, 2*Hp)
    g = jnp.dot(xh, w_g_ref[...], preferred_element_type=jnp.float32) + b_g_ref[...]

    r = jax.nn.sigmoid(g[:, 0 * H:1 * H])
    z = jax.nn.sigmoid(g[:, 1 * H:2 * H])
    n = jnp.tanh(g[:, 2 * H:3 * H] + r * g[:, 3 * H:4 * H])
    h_new = (1.0 - z) * n + z * h[:, :H]              # (bb, H)

    # Carry forward; padded lanes [H:Hp) are never written and stay zero.
    h_scratch[:, 0:H] = h_new

    # --- action head -----------------------------------------------------------
    q = jnp.dot(h_new.astype(jnp.bfloat16), w_out_ref[...],
                preferred_element_type=jnp.float32) + b_out_ref[...]
    q_ref[0] = q[:, :A]

    # Final hidden state is written out once per batch block.
    @pl.when(t == pl.num_programs(1) - 1)
    def _():
        h_out_ref[...] = h_new


# -----------------------------------------------------------------------------
# Wrappers
# -----------------------------------------------------------------------------
def _pick_batch_block(B):
    """Rows per grid block.  Once the batch is big enough, prefer >=2 grid
    steps on the 'parallel' axis so v7x's two TensorCores both get work;
    otherwise keep a single big block (v5e/v6e grid is a serial loop)."""
    if B >= 16:
        for cand in (256, B // 2):
            if cand >= 8 and cand % 8 == 0 and B % cand == 0 and B // cand >= 2:
                return cand
    return B


def tree_rnn_agent_rollout(inputs_seq, hidden_state, p):
    """inputs_seq: (T, B, D_in) f32, hidden_state: (..., H) f32
    -> (q (T, B, A) f32, h_final (B, H) f32)."""
    T, B, d_in = inputs_seq.shape
    H, A = p["hidden_dim"], p["n_actions"]
    Hp = p["w_enc"].shape[1]
    Ap = p["w_out"].shape[1]

    h0 = hidden_state.reshape(-1, H).astype(jnp.float32)
    assert h0.shape[0] == B, "hidden_state batch must match inputs batch"
    h0p = jnp.pad(h0, ((0, 0), (0, Hp - H)))          # one-time lane pad (wrapper)

    bb = _pick_batch_block(B)
    nb = B // bb
    grid = (nb, T)                                     # T innermost -> h carried in VMEM

    batch_t_map = lambda b, t: (t, b, 0)
    batch_map = lambda b, t: (b, 0)
    const_map = lambda b, t: (0, 0)                    # weights stay VMEM-resident

    in_specs = [
        pl.BlockSpec((1, bb, d_in), batch_t_map),      # x
        pl.BlockSpec((bb, Hp), batch_map),             # h0 (padded)
        pl.BlockSpec(p["w_enc"].shape, const_map),
        pl.BlockSpec(p["b_enc"].shape, const_map),
        pl.BlockSpec(p["w_gates"].shape, const_map),
        pl.BlockSpec(p["b_gates"].shape, const_map),
        pl.BlockSpec(p["w_out"].shape, const_map),
        pl.BlockSpec(p["b_out"].shape, const_map),
    ]
    out_specs = (
        pl.BlockSpec((1, bb, A), batch_t_map),         # q, unpadded
        pl.BlockSpec((bb, H), batch_map),              # h_final, unpadded
    )
    out_shape = (
        jax.ShapeDtypeStruct((T, B, A), jnp.float32),
        jax.ShapeDtypeStruct((B, H), jnp.float32),
    )

    weight_bytes = sum(
        int(p[k].size) * p[k].dtype.itemsize
        for k in ("w_enc", "b_enc", "w_gates", "b_gates", "w_out", "b_out"))
    cost = pl.CostEstimate(
        flops=2 * T * B * (d_in * Hp + (2 * Hp) * (4 * H) + H * Ap),
        transcendentals=T * B * 3 * H,
        bytes_accessed=T * B * (d_in + A) * 4 + B * (Hp + H) * 4 + weight_bytes,
    )

    q, h_last = pl.pallas_call(
        tree_rnn_rollout_kernel,
        grid=grid,
        in_specs=in_specs,
        out_specs=out_specs,
        out_shape=out_shape,
        scratch_shapes=[pltpu.VMEM((bb, Hp), jnp.float32)],
        compiler_params=pltpu.CompilerParams(
            dimension_semantics=("parallel", "arbitrary")),
        cost_estimate=cost,
    )(
        inputs_seq, h0p,
        p["w_enc"], p["b_enc"],
        p["w_gates"], p["b_gates"],
        p["w_out"], p["b_out"],
    )
    return q, h_last


def tree_rnn_agent_forward(inputs, hidden_state, p):
    """Single-step forward() matching the PyTorch module: (B, D_in), (..., H)
    -> (q (B, A), h (B, H)).  Same kernel, T = 1."""
    q, h = tree_rnn_agent_rollout(inputs[None], hidden_state, p)
    return q[0], h


# -----------------------------------------------------------------------------
# Parameters: logical (PyTorch-like) init + TPU-friendly packing
# -----------------------------------------------------------------------------
def init_params(key, input_shape, hidden_dim, n_actions):
    """Logical parameters, stored already transposed to (in, out); f32."""
    ks = jax.random.split(key, 6)
    scale = 0.1
    return {
        "w_enc": scale * jax.random.normal(ks[0], (input_shape, hidden_dim), jnp.float32),
        "b_enc": jnp.zeros((hidden_dim,), jnp.float32),
        "w_ih":  scale * jax.random.normal(ks[1], (3, hidden_dim, hidden_dim), jnp.float32),
        "b_ih":  scale * jax.random.normal(ks[2], (3, hidden_dim), jnp.float32),
        "w_hh":  scale * jax.random.normal(ks[3], (3, hidden_dim, hidden_dim), jnp.float32),
        "b_hh":  scale * jax.random.normal(ks[4], (3, hidden_dim), jnp.float32),
        "w_out": scale * jax.random.normal(ks[5], (hidden_dim, n_actions), jnp.float32),
        "b_out": jnp.zeros((n_actions,), jnp.float32),
    }


def pack_params(lp):
    """Pack logical params into the fused / densely packed / bf16 kernel layout."""
    d_in, H = lp["w_enc"].shape
    A = lp["w_out"].shape[1]
    Hp = _round_up(H, LANE)
    Ap = _round_up(A, LANE)

    w_enc = jnp.zeros((d_in, Hp), jnp.float32).at[:, :H].set(lp["w_enc"]).astype(jnp.bfloat16)
    b_enc = jnp.zeros((1, Hp), jnp.float32).at[0, :H].set(lp["b_enc"])

    # Fused GRU weight: contraction rows [enc (Hp) | h (Hp)],
    # output columns (each H wide): [r | z | n_input | n_hidden].
    w_g = jnp.zeros((2 * Hp, 4 * H), jnp.float32)
    w_g = w_g.at[0:H, 0:H].set(lp["w_ih"][0])             # r  <- enc
    w_g = w_g.at[Hp:Hp + H, 0:H].set(lp["w_hh"][0])       # r  <- h
    w_g = w_g.at[0:H, H:2 * H].set(lp["w_ih"][1])         # z  <- enc
    w_g = w_g.at[Hp:Hp + H, H:2 * H].set(lp["w_hh"][1])   # z  <- h
    w_g = w_g.at[0:H, 2 * H:3 * H].set(lp["w_ih"][2])     # n  <- enc
    w_g = w_g.at[Hp:Hp + H, 3 * H:4 * H].set(lp["w_hh"][2])  # n  <- h (kept separate for r*)
    w_g = w_g.astype(jnp.bfloat16)

    b_g = jnp.zeros((1, 4 * H), jnp.float32)
    b_g = b_g.at[0, 0:H].set(lp["b_ih"][0] + lp["b_hh"][0])       # pre-summed r bias
    b_g = b_g.at[0, H:2 * H].set(lp["b_ih"][1] + lp["b_hh"][1])   # pre-summed z bias
    b_g = b_g.at[0, 2 * H:3 * H].set(lp["b_ih"][2])               # b_in
    b_g = b_g.at[0, 3 * H:4 * H].set(lp["b_hh"][2])               # b_hn

    w_out = jnp.zeros((H, Ap), jnp.float32).at[:, :A].set(lp["w_out"]).astype(jnp.bfloat16)
    b_out = jnp.zeros((1, Ap), jnp.float32).at[0, :A].set(lp["b_out"])

    return {
        "w_enc": w_enc, "b_enc": b_enc,
        "w_gates": w_g, "b_gates": b_g,
        "w_out": w_out, "b_out": b_out,
        "hidden_dim": H, "n_actions": A,
    }


# -----------------------------------------------------------------------------
# References
# -----------------------------------------------------------------------------
def _reference_rollout_packed(inputs_seq, hidden_state, p):
    """Pure-JAX reference mirroring the kernel's packed/bf16 math exactly."""
    H, A = p["hidden_dim"], p["n_actions"]
    Hp = p["w_enc"].shape[1]
    h = hidden_state.reshape(-1, H).astype(jnp.float32)
    h = jnp.pad(h, ((0, 0), (0, Hp - H)))
    qs = []
    for t in range(inputs_seq.shape[0]):
        enc = jnp.maximum(
            jnp.dot(inputs_seq[t].astype(jnp.bfloat16), p["w_enc"],
                    preferred_element_type=jnp.float32) + p["b_enc"], 0.0)
        xh = jnp.concatenate([enc.astype(jnp.bfloat16), h.astype(jnp.bfloat16)], axis=-1)
        g = jnp.dot(xh, p["w_gates"], preferred_element_type=jnp.float32) + p["b_gates"]
        r = jax.nn.sigmoid(g[:, 0 * H:1 * H])
        z = jax.nn.sigmoid(g[:, 1 * H:2 * H])
        n = jnp.tanh(g[:, 2 * H:3 * H] + r * g[:, 3 * H:4 * H])
        h_new = (1.0 - z) * n + z * h[:, :H]
        h = h.at[:, :H].set(h_new)
        q = jnp.dot(h_new.astype(jnp.bfloat16), p["w_out"],
                    preferred_element_type=jnp.float32) + p["b_out"]
        qs.append(q[:, :A])
    return jnp.stack(qs), h[:, :H]


def _reference_rollout_f32(inputs_seq, hidden_state, lp):
    """Pure f32, unpadded reference mirroring the PyTorch module step-by-step."""
    H = lp["w_enc"].shape[1]
    h = hidden_state.reshape(-1, H)
    qs = []
    for t in range(inputs_seq.shape[0]):
        enc = jnp.maximum(inputs_seq[t] @ lp["w_enc"] + lp["b_enc"][None, :], 0.0)
        gi = [enc @ lp["w_ih"][i] + lp["b_ih"][i][None, :] for i in range(3)]
        gh = [h @ lp["w_hh"][i] + lp["b_hh"][i][None, :] for i in range(3)]
        r = jax.nn.sigmoid(gi[0] + gh[0])
        z = jax.nn.sigmoid(gi[1] + gh[1])
        n = jnp.tanh(gi[2] + r * gh[2])
        h = (1.0 - z) * n + z * h
        qs.append(h @ lp["w_out"] + lp["b_out"][None, :])
    return jnp.stack(qs), h


if __name__ == "__main__":
    # small config: batch_env=2, n_agents=4 -> B=8 ; obs dim 16 ; hidden 32 ; 8 actions
    batch_env, n_agents = 2, 4
    B = batch_env * n_agents
    input_shape, hidden_dim, n_actions = 16, 32, 8
    T = 8                                              # rollout length

    key = jax.random.PRNGKey(0)
    k_x, k_h, k_p = jax.random.split(key, 3)
    inputs_seq = jax.random.normal(k_x, (T, B, input_shape), jnp.float32)
    hidden_state = jax.random.normal(k_h, (batch_env, n_agents, hidden_dim), jnp.float32)

    logical = init_params(k_p, input_shape, hidden_dim, n_actions)
    params = pack_params(logical)

    # --- full rollout: all T steps fused into one pallas_call -----------------
    q_seq, h_last = tree_rnn_agent_rollout(inputs_seq, hidden_state, params)
    jax.block_until_ready((q_seq, h_last))

    # 1) Tight check vs. a reference mirroring the kernel's packed bf16 math.
    q_ref_p, h_ref_p = _reference_rollout_packed(inputs_seq, hidden_state, params)
    assert jnp.allclose(q_seq, q_ref_p, atol=1e-2, rtol=1e-2), "rollout mismatch vs packed ref"
    assert jnp.allclose(h_last, h_ref_p, atol=1e-2, rtol=1e-2), "rollout mismatch vs packed ref"

    # 2) Semantic check vs. the pure-f32 reference (PyTorch math); tolerance
    #    covers bf16 weight/operand rounding accumulated over T steps.
    q_ref_f, h_ref_f = _reference_rollout_f32(inputs_seq, hidden_state, logical)
    assert jnp.allclose(q_seq, q_ref_f, atol=5e-2, rtol=5e-2), "rollout mismatch vs f32 ref"
    assert jnp.allclose(h_last, h_ref_f, atol=5e-2, rtol=5e-2), "rollout mismatch vs f32 ref"

    # --- single-step forward() (module signature), same kernel with T = 1 -----
    q1, h1 = tree_rnn_agent_forward(inputs_seq[0], hidden_state, params)
    jax.block_until_ready((q1, h1))
    q1_ref, h1_ref = _reference_rollout_f32(inputs_seq[:1], hidden_state, logical)
    assert jnp.allclose(q1, q1_ref[0], atol=3e-2, rtol=3e-2), "single-step mismatch vs f32 ref"
    assert jnp.allclose(h1, h1_ref, atol=3e-2, rtol=3e-2), "single-step mismatch vs f32 ref"

    print("KERNEL_OK")
</pallas_src>

<mosaic_0001>
module attributes {stable_mosaic.version = 11 : i64} {
  func.func @tree_rnn_rollout_kernel(%arg0: i32, %arg1: i32, %arg2: memref<1x8x16xf32, #tpu.memory_space<vmem>>, %arg3: memref<8x128xf32, #tpu.memory_space<vmem>>, %arg4: memref<16x128xbf16, #tpu.memory_space<vmem>>, %arg5: memref<1x128xf32, #tpu.memory_space<vmem>>, %arg6: memref<256x128xbf16, #tpu.memory_space<vmem>>, %arg7: memref<1x128xf32, #tpu.memory_space<vmem>>, %arg8: memref<32x128xbf16, #tpu.memory_space<vmem>>, %arg9: memref<1x128xf32, #tpu.memory_space<vmem>>, %arg10: memref<1x8x8xf32, #tpu.memory_space<vmem>>, %arg11: memref<8x32xf32, #tpu.memory_space<vmem>>, %arg12: memref<8x128xf32, #tpu.memory_space<vmem>>) attributes {dimension_semantics = [#tpu.dimension_semantics<parallel>, #tpu.dimension_semantics<arbitrary>], iteration_bounds = array<i64: 1, 8>, scalar_prefetch = 0 : i64, scratch_operands = 1 : i64, tpu.core_type = #tpu.core_type<tc>, window_params = [{transform_indices = @transform_0, window_bounds = array<i64: 1, 8, 16>}, {transform_indices = @transform_1, window_bounds = array<i64: 8, 128>}, {pipeline_mode = #tpu.pipeline_mode<synchronous>, transform_indices = @transform_2, window_bounds = array<i64: 16, 128>}, {pipeline_mode = #tpu.pipeline_mode<synchronous>, transform_indices = @transform_3, window_bounds = array<i64: 1, 128>}, {pipeline_mode = #tpu.pipeline_mode<synchronous>, transform_indices = @transform_4, window_bounds = array<i64: 256, 128>}, {pipeline_mode = #tpu.pipeline_mode<synchronous>, transform_indices = @transform_5, window_bounds = array<i64: 1, 128>}, {pipeline_mode = #tpu.pipeline_mode<synchronous>, transform_indices = @transform_6, window_bounds = array<i64: 32, 128>}, {pipeline_mode = #tpu.pipeline_mode<synchronous>, transform_indices = @transform_7, window_bounds = array<i64: 1, 128>}, {transform_indices = @transform_8, window_bounds = array<i64: 1, 8, 8>}, {transform_indices = @transform_9, window_bounds = array<i64: 8, 32>}]} {
    %c0_i32 = arith.constant 0 : i32
    %0 = arith.cmpi eq, %arg1, %c0_i32 : i32
    %1 = arith.extui %0 : i1 to i32
    %c0_i32_0 = arith.constant 0 : i32
    %2 = arith.cmpi ne, %1, %c0_i32_0 : i32
    scf.if %2 {
      %c0_29 = arith.constant 0 : index
      %c0_30 = arith.constant 0 : index
      %59 = vector.load %arg3[%c0_29, %c0_30] : memref<8x128xf32, #tpu.memory_space<vmem>>, vector<8x128xf32>
      %c0_31 = arith.constant 0 : index
      %c0_32 = arith.constant 0 : index
      %60 = vector.load %arg12[%c0_31, %c0_32] : memref<8x128xf32, #tpu.memory_space<vmem>>, vector<8x128xf32>
      tpu.vector_store %arg12[%c0_31, %c0_32], %59 {strides = array<i32>} : memref<8x128xf32, #tpu.memory_space<vmem>>, vector<8x128xf32>,
    } else {
    }
    %c0 = arith.constant 0 : index
    %c0_1 = arith.constant 0 : index
    %c0_2 = arith.constant 0 : index
    %3 = vector.load %arg2[%c0, %c0_1, %c0_2] : memref<1x8x16xf32, #tpu.memory_space<vmem>>, vector<1x8x16xf32>
    %4 = vector.shape_cast %3 : vector<1x8x16xf32> to vector<8x16xf32>
    %c0_3 = arith.constant 0 : index
    %c0_4 = arith.constant 0 : index
    %5 = vector.load %arg12[%c0_3, %c0_4] : memref<8x128xf32, #tpu.memory_space<vmem>>, vector<8x128xf32>
    %6 = arith.truncf %4 : vector<8x16xf32> to vector<8x16xbf16>
    %c0_5 = arith.constant 0 : index
    %c0_6 = arith.constant 0 : index
    %7 = vector.load %arg4[%c0_5, %c0_6] : memref<16x128xbf16, #tpu.memory_space<vmem>>, vector<16x128xbf16>
    %cst = arith.constant dense<0.000000e+00> : vector<8x128xf32>
    %8 = tpu.matmul %6, %7, %cst {dimension_numbers = #tpu.dot_dimension_numbers<[1], [0], [0], [1], [0, 0, 1, 1], [], []>} : vector<8x16xbf16>, vector<16x128xbf16>, vector<8x128xf32> -> vector<8x128xf32>
    %c0_7 = arith.constant 0 : index
    %c0_8 = arith.constant 0 : index
    %9 = vector.load %arg5[%c0_7, %c0_8] : memref<1x128xf32, #tpu.memory_space<vmem>>, vector<1x128xf32>
    %10 = vector.broadcast %9 : vector<1x128xf32> to vector<8x128xf32>
    %11 = arith.addf %8, %10 : vector<8x128xf32>
    %cst_9 = arith.constant 0.000000e+00 : f32
    %12 = vector.broadcast %cst_9 : f32 to vector<8x128xf32>
    %13 = arith.maximumf %11, %12 : vector<8x128xf32>
    %14 = arith.truncf %13 : vector<8x128xf32> to vector<8x128xbf16>
    %15 = arith.truncf %5 : vector<8x128xf32> to vector<8x128xbf16>
    %16 = tpu.concatenate %14, %15 in 1 : vector<8x128xbf16>, vector<8x128xbf16> -> vector<8x256xbf16>
    %c0_10 = arith.constant 0 : index
    %c0_11 = arith.constant 0 : index
    %17 = vector.load %arg6[%c0_10, %c0_11] : memref<256x128xbf16, #tpu.memory_space<vmem>>, vector<256x128xbf16>
    %cst_12 = arith.constant dense<0.000000e+00> : vector<8x128xf32>
    %18 = tpu.matmul %16, %17, %cst_12 {dimension_numbers = #tpu.dot_dimension_numbers<[1], [0], [0], [1], [0, 0, 1, 1], [], []>} : vector<8x256xbf16>, vector<256x128xbf16>, vector<8x128xf32> -> vector<8x128xf32>
    %c0_13 = arith.constant 0 : index
    %c0_14 = arith.constant 0 : index
    %19 = vector.load %arg7[%c0_13, %c0_14] : memref<1x128xf32, #tpu.memory_space<vmem>>, vector<1x128xf32>
    %20 = vector.broadcast %19 : vector<1x128xf32> to vector<8x128xf32>
    %21 = arith.addf %18, %20 : vector<8x128xf32>
    %22 = vector.extract_strided_slice %21 {offsets = [0, 0], sizes = [8, 32], strides = [1, 1]} : vector<8x128xf32> to vector<8x32xf32>
    %23 = arith.negf %22 : vector<8x32xf32>
    %24 = math.exp %23 : vector<8x32xf32>
    %cst_15 = arith.constant 1.000000e+00 : f32
    %25 = vector.broadcast %cst_15 : f32 to vector<8x32xf32>
    %26 = arith.addf %25, %24 : vector<8x32xf32>
    %27 = arith.divf %25, %26 : vector<8x32xf32>
    %28 = vector.extract_strided_slice %21 {offsets = [0, 32], sizes = [8, 32], strides = [1, 1]} : vector<8x128xf32> to vector<8x32xf32>
    %29 = arith.negf %28 : vector<8x32xf32>
    %30 = math.exp %29 : vector<8x32xf32>
    %cst_16 = arith.constant 1.000000e+00 : f32
    %31 = vector.broadcast %cst_16 : f32 to vector<8x32xf32>
    %32 = arith.addf %31, %30 : vector<8x32xf32>
    %33 = arith.divf %31, %32 : vector<8x32xf32>
    %34 = vector.extract_strided_slice %21 {offsets = [0, 64], sizes = [8, 32], strides = [1, 1]} : vector<8x128xf32> to vector<8x32xf32>
    %35 = vector.extract_strided_slice %21 {offsets = [0, 96], sizes = [8, 32], strides = [1, 1]} : vector<8x128xf32> to vector<8x32xf32>
    %36 = arith.mulf %27, %35 : vector<8x32xf32>
    %37 = arith.addf %34, %36 : vector<8x32xf32>
    %38 = math.tanh %37 : vector<8x32xf32>
    %cst_17 = arith.constant 1.000000e+00 : f32
    %39 = vector.broadcast %cst_17 : f32 to vector<8x32xf32>
    %40 = arith.subf %39, %33 : vector<8x32xf32>
    %41 = arith.mulf %40, %38 : vector<8x32xf32>
    %42 = vector.extract_strided_slice %5 {offsets = [0, 0], sizes = [8, 32], strides = [1, 1]} : vector<8x128xf32> to vector<8x32xf32>
    %43 = arith.mulf %33, %42 : vector<8x32xf32>
    %44 = arith.addf %41, %43 : vector<8x32xf32>
    %c0_18 = arith.constant 0 : index
    %c0_19 = arith.constant 0 : index
    %45 = vector.load %arg12[%c0_18, %c0_19] : memref<8x128xf32, #tpu.memory_space<vmem>>, vector<8x32xf32>
    tpu.vector_store %arg12[%c0_18, %c0_19], %44 {strides = array<i32>} : memref<8x128xf32, #tpu.memory_space<vmem>>, vector<8x32xf32>,
    %46 = arith.truncf %44 : vector<8x32xf32> to vector<8x32xbf16>
    %c0_20 = arith.constant 0 : index
    %c0_21 = arith.constant 0 : index
    %47 = vector.load %arg8[%c0_20, %c0_21] : memref<32x128xbf16, #tpu.memory_space<vmem>>, vector<32x128xbf16>
    %cst_22 = arith.constant dense<0.000000e+00> : vector<8x128xf32>
    %48 = tpu.matmul %46, %47, %cst_22 {dimension_numbers = #tpu.dot_dimension_numbers<[1], [0], [0], [1], [0, 0, 1, 1], [], []>} : vector<8x32xbf16>, vector<32x128xbf16>, vector<8x128xf32> -> vector<8x128xf32>
    %c0_23 = arith.constant 0 : index
    %c0_24 = arith.constant 0 : index
    %49 = vector.load %arg9[%c0_23, %c0_24] : memref<1x128xf32, #tpu.memory_space<vmem>>, vector<1x128xf32>
    %50 = vector.broadcast %49 : vector<1x128xf32> to vector<8x128xf32>
    %51 = arith.addf %48, %50 : vector<8x128xf32>
    %52 = vector.extract_strided_slice %51 {offsets = [0, 0], sizes = [8, 8], strides = [1, 1]} : vector<8x128xf32> to vector<8x8xf32>
    %c0_25 = arith.constant 0 : index
    %c0_26 = arith.constant 0 : index
    %c0_27 = arith.constant 0 : index
    %53 = vector.load %arg10[%c0_25, %c0_26, %c0_27] : memref<1x8x8xf32, #tpu.memory_space<vmem>>, vector<1x8x8xf32>
    %54 = vector.shape_cast %53 : vector<1x8x8xf32> to vector<8x8xf32>
    %55 = vector.shape_cast %52 : vector<8x8xf32> to vector<1x8x8xf32>
    tpu.vector_store %arg10[%c0_25, %c0_26, %c0_27], %55 {strides = array<i32>} : memref<1x8x8xf32, #tpu.memory_space<vmem>>, vector<1x8x8xf32>,
    %c7_i32 = arith.constant 7 : i32
    %56 = arith.cmpi eq, %arg1, %c7_i32 : i32
    %57 = arith.extui %56 : i1 to i32
    %c0_i32_28 = arith.constant 0 : i32
    %58 = arith.cmpi ne, %57, %c0_i32_28 : i32
    scf.if %58 {
      %c0_29 = arith.constant 0 : index
      %c0_30 = arith.constant 0 : index
      %59 = vector.load %arg11[%c0_29, %c0_30] : memref<8x32xf32, #tpu.memory_space<vmem>>, vector<8x32xf32>
      tpu.vector_store %arg11[%c0_29, %c0_30], %44 {strides = array<i32>} : memref<8x32xf32, #tpu.memory_space<vmem>>, vector<8x32xf32>,
    } else {
    }
    return
  }
  func.func @transform_0(%arg0: i32, %arg1: i32) -> (i32, i32, i32) {
    %c0_i32 = arith.constant 0 : i32
    %c0_i32_0 = arith.constant 0 : i32
    return %arg1, %arg0, %c0_i32 : i32, i32, i32
  }
  func.func @transform_1(%arg0: i32, %arg1: i32) -> (i32, i32) {
    %c0_i32 = arith.constant 0 : i32
    %c0_i32_0 = arith.constant 0 : i32
    return %arg0, %c0_i32 : i32, i32
  }
  func.func @transform_2(%arg0: i32, %arg1: i32) -> (i32, i32) {
    %c0_i32 = arith.constant 0 : i32
    %c0_i32_0 = arith.constant 0 : i32
    %c0_i32_1 = arith.constant 0 : i32
    return %c0_i32, %c0_i32_0 : i32, i32
  }
  func.func @transform_3(%arg0: i32, %arg1: i32) -> (i32, i32) {
    %c0_i32 = arith.constant 0 : i32
    %c0_i32_0 = arith.constant 0 : i32
    %c0_i32_1 = arith.constant 0 : i32
    return %c0_i32, %c0_i32_0 : i32, i32
  }
  func.func @transform_4(%arg0: i32, %arg1: i32) -> (i32, i32) {
    %c0_i32 = arith.constant 0 : i32
    %c0_i32_0 = arith.constant 0 : i32
    %c0_i32_1 = arith.constant 0 : i32
    return %c0_i32, %c0_i32_0 : i32, i32
  }
  func.func @transform_5(%arg0: i32, %arg1: i32) -> (i32, i32) {
    %c0_i32 = arith.constant 0 : i32
    %c0_i32_0 = arith.constant 0 : i32
    %c0_i32_1 = arith.constant 0 : i32
    return %c0_i32, %c0_i32_0 : i32, i32
  }
  func.func @transform_6(%arg0: i32, %arg1: i32) -> (i32, i32) {
    %c0_i32 = arith.constant 0 : i32
    %c0_i32_0 = arith.constant 0 : i32
    %c0_i32_1 = arith.constant 0 : i32
    return %c0_i32, %c0_i32_0 : i32, i32
  }
  func.func @transform_7(%arg0: i32, %arg1: i32) -> (i32, i32) {
    %c0_i32 = arith.constant 0 : i32
    %c0_i32_0 = arith.constant 0 : i32
    %c0_i32_1 = arith.constant 0 : i32
    return %c0_i32, %c0_i32_0 : i32, i32
  }
  func.func @transform_8(%arg0: i32, %arg1: i32) -> (i32, i32, i32) {
    %c0_i32 = arith.constant 0 : i32
    %c0_i32_0 = arith.constant 0 : i32
    return %arg1, %arg0, %c0_i32 : i32, i32, i32
  }
  func.func @transform_9(%arg0: i32, %arg1: i32) -> (i32, i32) {
    %c0_i32 = arith.constant 0 : i32
    %c0_i32_0 = arith.constant 0 : i32
    return %arg0, %c0_i32 : i32, i32
  }
}

</mosaic_0001>

<bundles_post_ra>
// kernel: tpu_custom_call.1
= control target key start
LH: loop header
LB: loop body
LE: loop exit
PB: predicated region body
PF: predicated region fallthrough
CT: control target
= control target key end

     0   :  { %s1757_s0 = inlined_call_operand.hbm [shape: f32[8,8,16], index: 0, kind: input, shape index: {}]   ;;  %s1758_s1 = inlined_call_operand.hbm [shape: f32[8,128], index: 1, kind: input, shape index: {}]   ;;  %s1759_s2 = inlined_call_operand.hbm [shape: bf16[16,128], index: 2, kind: input, shape index: {}]   ;;  %s1760_s3 = inlined_call_operand.vmem [shape: f32[1,128], index: 3, kind: input, shape index: {}]   ;;  %s1761_s4 = inlined_call_operand.hbm [shape: bf16[256,128], index: 4, kind: input, shape index: {}]   ;;  %s1762_s5 = inlined_call_operand.vmem [shape: f32[1,128], index: 5, kind: input, shape index: {}]   ;;  %s1763_s6 = inlined_call_operand.vmem [shape: bf16[32,128], index: 6, kind: input, shape index: {}]   ;;  %s1764_s7 = inlined_call_operand.vmem [shape: f32[1,128], index: 7, kind: input, shape index: {}]   ;;  %s1765_s8 = inlined_call_operand.hbm [shape: f32[8,8,8], index: 8, kind: output, shape index: {0}]   ;;  %s1766_s9 = inlined_call_operand.hbm [shape: f32[8,32], index: 9, kind: output, shape index: {1}]  }
   0x1   :  { %1776 = sst [smem:[#allocation21_spill]] %s1758_s1 }
   0x2   :  { %1777 = sst [smem:[#allocation22_spill]] %s1765_s8 }
   0x3   :  { %1778 = sst [smem:[#allocation23_spill]] %s1766_s9 }
   0x4   :  { %15 = vsyncpa [#allocation4], 0 }
   0x5   :  { %17 = vsyncpa [#allocation4 + $0x1], 0 }
   0x6   :  { %18 = vsyncpa [#allocation7], 0 }
   0x7   :  { %19 = vsyncpa [#allocation10], 0 }
   0x8   :  { %20 = vsyncpa [#allocation5], 0 }
   0x9   :  { %22 = vsyncpa [#allocation5 + $0x1], 0 }
   0xa   :  { %23 = vsyncpa [#allocation13], 0  ;;  %s1449_s30 = smov 0   ;;  %s1451_s10 = smov 0  }
   0xb   :  { %s1453_s11 = smov 0   ;;  %s1455_s12 = smov 0  }
   0xc   :  { %s1457_s13 = smov 0   ;;  %s1459_s14 = smov 0  }
   0xd LB: > { %1779 = sst [smem:[#allocation19_spill]] %s1364_s30  ;;  %s929_s15 = sadd.s32 4294967295, %s1384_s14   ;;  %s1384_s14 = sphi %s1459_s14, %s29_s14   ;;  %s1380_s13 = sphi %s1457_s13, %s1805_s13   ;;  %s1376_s12 = sphi %s1455_s12, %s1804_s12   ;;  %s1372_s11 = sphi %s1453_s11, %s1803_s11   ;;  %s1368_s10 = sphi %s1451_s10, %s1802_s10   ;;  %s1364_s30 = sphi %s1449_s30, %s1801_s30  }
   0xe   : > { %s930_s16 = sadd.s32 4294967294, %s1384_s14   ;;  %p63_p0 = scmp.ne.s32.totalorder %s1368_s10, %s1364_s30 }
   0xf   : > { %p1483_p1 = scmp.eq.s32.totalorder %s929_s15, 0  ;;  %p1487_p2 = scmp.eq.s32.totalorder %s929_s15, 7 }
  0x10   : > { %p247_p3 = scmp.eq.s32.totalorder %s930_s16, 7  ;;  %p931_p5 = scmp.ge.s32.totalorder %s1384_s14, 1 }
  0x11   : > { %s1780_s17 = scalar_select %p1483_p1, 1, 0 }
  0x12   : > { %s1781_s18 = scalar_select %p1487_p2, 1, 0 }
  0x13   : > { %p1493_p4 = por %p1483_p1, %p63_p0  ;;  %p1498_p6 = por %p247_p3, %p63_p0 }
  0x14   : > { %p280_p7 = scmp.lt.s32.totalorder %s1384_s14, 9  ;;  %s1386_s22 = smov [#allocation6]  }
  0x15   : > { %s1782_s19 = scalar_select %p1493_p4, 1, 0 }
  0x16   : > { %s1783_s20 = scalar_select %p1498_p6, 1, 0 }
  0x17   : > { %p1503_p8 = pnand %p931_p5, %p280_p7  ;;  %s295_s23 = sshll.u32 %s1386_s22, 4  ;;  %s296_s23 = int_to_ptr.vmem [resolvable:$true] %s295_s23 }
  0x18   : > { %1784 = sst [smem:[#allocation20_spill]] %s1783_s20  ;;  %s1387_s24 = smov [#allocation8]  }
  0x19   : > { %s1785_s21 = scalar_select %p1503_p8, 1, 0 }
  0x1a   : > { %p1038_p9 = pneg %p1503_p8  ;;  %s305_s25 = sshll.u32 %s1387_s24, 4  ;;  %s1515_s25 = int_to_ptr.vmem [resolvable:$true] %s305_s25 }
  0x1b   : > { %s1388_s27 = smov [#allocation9]   ;;  %s1787_s1 = sld [smem:[#allocation21_spill]] }
  0x1c   : > { %p1511_p10 = pnand %p1038_p9, %p1483_p1  ;;  %s1517_s28 = sshll.u32 %s1388_s27, 4  ;;  %s322_s28 = int_to_ptr.vmem [resolvable:$true] %s1517_s28 }
  0x1e   : > { %p1527_p12 = pneg %p1511_p10 }
  0x21   : > { %s1150_s16 = scalar_lea.hbm %s1787_s1, 128 }
  0x22   : > { %p1151_p11 = scmp.ne.s32.totalorder %s1787_s1, %s1150_s16  ;;  %p1157_p3 = scmp.lt.u32.totalorder %s1150_s16, %s1787_s1 }
  0x24   : > { %p1153_p13 = pnand %p1527_p12, %p1151_p11 }
  0x26   : > { %p1154_p0 = pneg %p1153_p13 }
  0x28   : > { %p1159_p5 = pnand %p1157_p3, %p1154_p0 }
  0x2a   : > { %1162 = shalt.err (!%p1159_p5)
}
  0x2b   : > { %s1163_s29 = scalar_lea.vmem %s296_s23, 128  ;;  %p1171_p1 = scmp.lt.s32.totalorder %s296_s23, %s296_s23 }
  0x2c   : > { %p1164_p7 = scmp.ne.s32.totalorder %s296_s23, %s1163_s29  ;;  %p1172_p4 = scmp.lt.s32.totalorder %s1163_s29, %s1163_s29 }
  0x2e   : > { %p1166_p9 = pnand %p1164_p7, %p1527_p12  ;;  %p1173_p8 = por %p1172_p4, %p1171_p1 }
  0x30   : > { %p1167_p6 = pneg %p1166_p9 }
  0x32   : > { %p1174_p2 = pnand %p1173_p8, %p1167_p6 }
  0x34   : > { %1177 = shalt.err (!%p1174_p2)
}
  0x35   : > { %1041 = dma.hbm_to_vmem [thread:$0]  (!%p1511_p10), %s1787_s1, 128, %s296_s23, [#allocation7]  }
  0x36   : > { %s1178_s22 = scalar_lea.hbm %s1759_s2, 128 }
  0x37   : > { %p1179_p11 = scmp.ne.s32.totalorder %s1759_s2, %s1178_s22  ;;  %p1185_p2 = scmp.lt.u32.totalorder %s1178_s22, %s1759_s2 }
  0x39   : > { %p1181_p13 = pnand %p1179_p11, %p1527_p12 }
  0x3b   : > { %p1182_p1 = pneg %p1181_p13 }
  0x3d   : > { %p1187_p4 = pnand %p1185_p2, %p1182_p1 }
  0x3f   : > { %1190 = shalt.err (!%p1187_p4)
}
  0x40   : > { %s1191_s23 = scalar_lea.vmem %s1515_s25, 128  ;;  %p1199_p3 = scmp.lt.s32.totalorder %s1515_s25, %s1515_s25 }
  0x41   : > { %p1192_p6 = scmp.ne.s32.totalorder %s1515_s25, %s1191_s23  ;;  %p1200_p5 = scmp.lt.s32.totalorder %s1191_s23, %s1191_s23 }
  0x43   : > { %p1194_p8 = pnand %p1192_p6, %p1527_p12  ;;  %p1201_p7 = por %p1200_p5, %p1199_p3 }
  0x45   : > { %p1195_p0 = pneg %p1194_p8 }
  0x47   : > { %p1202_p9 = pnand %p1201_p7, %p1195_p0 }
  0x49   : > { %1205 = shalt.err (!%p1202_p9)
}
  0x4a   : > { %s1389_s9 = smov 64   ;;  %s1390_s8 = smov 4  }
  0x4b   : > { %1044 = dma.hbm_to_vmem [thread:$0]  (!%p1511_p10), %s1759_s2, 128, %s1515_s25, [#allocation7], %s1389_s9, %s1389_s9, %s1390_s8  }
  0x4c   : > { %s1206_s22 = scalar_lea.hbm %s1761_s4, 2048 }
  0x4d   : > { %p1207_p11 = scmp.ne.s32.totalorder %s1761_s4, %s1206_s22  ;;  %p1213_p2 = scmp.lt.u32.totalorder %s1206_s22, %s1761_s4 }
  0x4f   : > { %p1209_p13 = pnand %p1207_p11, %p1527_p12 }
  0x51   : > { %p1210_p1 = pneg %p1209_p13 }
  0x53   : > { %p1215_p4 = pnand %p1213_p2, %p1210_p1 }
  0x55   : > { %1218 = shalt.err (!%p1215_p4)
}
  0x56   : > { %s1219_s20 = scalar_lea.vmem %s322_s28, 2048  ;;  %p1227_p3 = scmp.lt.s32.totalorder %s322_s28, %s322_s28 }
  0x57   : > { %p1220_p6 = scmp.ne.s32.totalorder %s322_s28, %s1219_s20  ;;  %p1228_p5 = scmp.lt.s32.totalorder %s1219_s20, %s1219_s20 }
  0x59   : > { %p1222_p8 = pnand %p1220_p6, %p1527_p12  ;;  %p1229_p7 = por %p1228_p5, %p1227_p3 }
  0x5b   : > { %p1223_p0 = pneg %p1222_p8 }
  0x5d   : > { %p1230_p9 = pnand %p1229_p7, %p1223_p0 }
  0x5f   : > { %1233 = shalt.err (!%p1230_p9)
}
  0x60   : > { %1047 = dma.hbm_to_vmem [thread:$0]  (!%p1511_p10), %s1761_s4, 2048, %s322_s28, [#allocation10], %s1389_s9, %s1389_s9, %s1390_s8  }
  0x61   : > { %s50_s1 = sadd.s32 1, %s1372_s11  ;;  %s38_s24 = sadd.s32 1, %s1380_s13 }
  0x62   : > { %p57_p12 = scmp.ne.s32.totalorder %s1372_s11, %s1368_s10  ;;  %p39_p11 = scmp.ge.s32.totalorder %s38_s24, 8 }
  0x63   : > { %p58_p13 = scmp.eq.s32.totalorder %s1384_s14, 0  ;;  %p1789_p1 = scmp.ne.s32.totalorder %s1781_s18, 0 }
  0x64   : > { %p1059_p4 = scmp.lt.s32.totalorder %s1384_s14, 8  ;;  %s1807_s24 = smov (%p39_p11, %s38_s24), 0 }
  0x65   : > { %p1592_p2 = por %p1789_p1, %p57_p12  ;;  %p59_p6 = por %p58_p13, %p57_p12 }
  0x66   : > { %s344_s30 = sand.u32 1, %s1372_s11   ;;  %s45_s16 = ssub.s32 %s1380_s13, %s1807_s24 }
  0x67   : > { %p48_p8 = scmp.eq.s32.totalorder %s45_s16, 0  ;;  %s936_s28 = sshll.u32 %s344_s30, 3 }
  0x68   : > { %s937_s9 = sshll.u32 %s1380_s13, 7  ;;  %s348_s23 = scalar_lea.vmem [#allocation3], %s936_s28 }
  0x69   : > { %s1604_s8 = scalar_select %p48_p8, %s1372_s11, %s50_s1  }
  0x6a   : > { %s1609_s29 = scalar_lea.hbm %s1757_s0, %s937_s9  ;;  %s356_s20 = sshll.u32 %s348_s23, 4  ;;  %s1611_s20 = int_to_ptr.vmem [resolvable:$true] %s356_s20 }
  0x6b   : > { %p1615_p10 = pnand %p1059_p4, %p59_p6  ;;  %s345_s15 = scalar_lea.sflag [#allocation4], %s344_s30 }
  0x6c   : > { %s1234_s1 = scalar_lea.hbm %s1609_s29, 128  ;;  %s1239_s9 = scalar_lea.hbm %s1757_s0, 1024 }
  0x6d   : > { %p1235_p0 = scmp.ne.s32.totalorder %s1609_s29, %s1234_s1  ;;  %p1236_p3 = pneg %p1615_p10 }
  0x6e   : > { %p1240_p9 = scmp.lt.u32.totalorder %s1609_s29, %s1757_s0  ;;  %p1241_p12 = scmp.lt.u32.totalorder %s1239_s9, %s1234_s1 }
  0x6f   : > { %p1237_p5 = pnand %p1236_p3, %p1235_p0  ;;  %p1243_p13 = scmp.lt.u32.totalorder %s1234_s1, %s1609_s29 }
  0x70   : > { %p1242_p11 = por %p1241_p12, %p1240_p9 }
  0x71   : > { %p1238_p7 = pneg %p1237_p5 }
  0x72   : > { %p1244_p1 = por %p1243_p13, %p1242_p11 }
  0x74   : > { %p1245_p4 = pnand %p1244_p1, %p1238_p7 }
  0x76   : > { %1248 = shalt.err (!%p1245_p4)
}
  0x77   : > { %s1249_s30 = scalar_lea.vmem %s1611_s20, 128  ;;  %s1391_s23 = smov [#allocation3]  }
  0x78   : > { %p1250_p6 = scmp.ne.s32.totalorder %s1611_s20, %s1249_s30  ;;  %s1254_s16 = sshll.u32 %s1391_s23, 4  ;;  %s1255_s16 = int_to_ptr.vmem [resolvable:$false] %s1254_s16 }
  0x79   : > { %s1256_s28 = scalar_lea.vmem %s1255_s16, 256  ;;  %p1257_p5 = scmp.lt.s32.totalorder %s1611_s20, %s1255_s16 }
  0x7a   : > { %p1252_p8 = pnand %p1250_p6, %p1236_p3  ;;  %p1258_p9 = scmp.lt.s32.totalorder %s1256_s28, %s1249_s30 }
  0x7c   : > { %p1253_p0 = pneg %p1252_p8  ;;  %p1259_p12 = por %p1258_p9, %p1257_p5 }
  0x7e   : > { %p1260_p11 = pnand %p1259_p12, %p1253_p0 }
  0x80   : > { %1263 = shalt.err (!%p1260_p11)
}
  0x81   : > { %1051 = dma.hbm_to_vmem [thread:$0]  (!%p1615_p10), %s1609_s29, 128, %s1611_s20, %s345_s15  }
  0x82   : > { %p1792_p7 = scmp.ne.s32.totalorder %s1785_s21, 0 }
  0x83   : > { %s1647_s1 = sand.u32 (!%p1792_p7), 1, %s1368_s10   ;;  %p1793_p3 = scmp.ne.s32.totalorder (!%p1792_p7), %s1782_s19, 0 }
  0x84   : > { %365 = sbr.rel (%p1792_p7) target bundleno = 1349 (0x545), region = 52  ;;  %s939_s9 = sshll.u32 (!%p1792_p7), %s1647_s1, 3 }
  0x85   : > { %s368_s22 = scalar_lea.sflag (!%p1792_p7), [#allocation4], %s1647_s1  ;;  %s371_s27 = scalar_lea.vmem (!%p1792_p7), [#allocation3], %s939_s9 }
  0x8b   : > { %1343 = dma.done.wait (%p1793_p3), %s368_s22, 128  }
  0x8c   : > { %1345 = vsyncadd (%p1793_p3), %s368_s22, 4294967168  ;;  %p1794_p13 = scmp.ne.s32.totalorder %s1780_s17, 0 }
  0x8e   : > { %1347 = dma.done.wait (%p1794_p13), [#allocation7], 256  }
  0x8f   : > { %1349 = vsyncadd (%p1794_p13), [#allocation7], 4294967040 }
  0x90   : > { %1351 = dma.done.wait (%p1794_p13), [#allocation10], 2048  }
  0x91   : > { %1353 = vsyncadd (%p1794_p13), [#allocation10], 4294965248  ;;  %s1663_s21 = scalar_lea.vmem [#allocation11], %s939_s9  ;;  %p944_p10 = scmp.ne.s32.totalorder %s1376_s12, 0 }
  0x92   : > { %v423_v0 = vld [vmem:[#allocation6] sm:$0xff] (!%p944_p10) }
  0x93   : > { %422 = sbr.rel (%p944_p10) target bundleno = 154 (0x9a), region = 72  ;;  %424 = vst [vmem:[#allocation2] sm:$0xff] (!%p944_p10), %v423_v0 }
  0x9a PF: > { %v1125_v1 = vld [vmem:[#allocation8] sm:$0xff]   ;;  %v1392_v2 = vmov 0.0   ;;  %v425_v3 = vld [vmem:[%s371_s27] sm:$0xff]  ;;  %vm443_vm0 = vcmask 130048   ;;  %vm1393_vm1 = vmmov 0   ;;  %v1130_v9 = vld [vmem:[#allocation9 + $0x50] sm:$0xff]  }
  0x9b   : > { %1004 = vmatprep.subr.bf16.mxu0 %v1392_v2  ;;  %v1126_v4 = vld [vmem:[#allocation9 + $0x40] sm:$0xff]   ;;  %1006 = vmatprep.mubr.msk.bf16.mxu0 %vm1393_vm1, %v1392_v2  ;;  %v427_v5 = vpack.c.bf16 %v425_v3, %v425_v3  ;;  %v1128_v7 = vld [vmem:[#allocation9 + $0x48] sm:$0xff]   ;;  %v1131_v10 = vld [vmem:[#allocation9 + $0x10] sm:$0xff]   ;;  %s1394_s25 = smov 32   ;;  %s1395_s15 = smov 64   ;;  %vm698_vm2 = vcmask 261120  }
  0x9c   : > { %1005 = vmatpush3.bf16.msra.mxu0 %v1125_v1  ;;  %979 = vmatprep.subr.bf16.mxu1 %v1126_v4  ;;  %v1127_v6 = vld [vmem:[#allocation9] sm:$0xff]   ;;  %v1129_v8 = vld [vmem:[#allocation9 + $0x8] sm:$0xff]   ;;  %v1132_v11 = vld [vmem:[#allocation9 + $0x58] sm:$0xff]   ;;  %s1396_s9 = smov 96   ;;  %vm770_vm3 = vcmask 64512   ;;  %p970_p1 = scmp.ne.s32.totalorder %s1376_s12, 7 }
  0x9d   : > { %1010 = vmatprep.subr.bf16.mxu0 %v1392_v2  ;;  %980 = vmatpush3.bf16.msra.mxu1 %v1127_v6  ;;  %v1133_v12 = vld [vmem:[#allocation9 + $0x18] sm:$0xff]   ;;  %v1134_v13 = vld [vmem:[#allocation9 + $0x60] sm:$0xff]   ;;  %v1136_v15 = vld [vmem:[#allocation9 + $0x68] sm:$0xff]  }
  0x9e   : > { %981 = vmatprep.subr.bf16.mxu1 %v1128_v7  ;;  %v1135_v14 = vld [vmem:[#allocation9 + $0x20] sm:$0xff]   ;;  %v1137_v16 = vld [vmem:[#allocation9 + $0x28] sm:$0xff]   ;;  %v1138_v17 = vld [vmem:[#allocation9 + $0x70] sm:$0xff]  }
  0x9f   : > { %1007 = vmatmul.mubr.msk.bf16.vlgmr.msra.gmra.mrb[0].mxu0 %vm443_vm0, %v427_v5  ;;  %v1139_v18 = vld [vmem:[#allocation9 + $0x30] sm:$0xff]   ;;  %v1140_v19 = vld [vmem:[#allocation9 + $0x78] sm:$0xff]   ;;  %v1143_v48 = vld [vmem:[%s1763_s6 + $0x8] sm:$0xff]  }
  0xa0   : > { %1014 = vmatprep.mubr.msk.bf16.mxu0 %vm1393_vm1, %v1392_v2  ;;  %v1141_v20 = vld [vmem:[#allocation9 + $0x38] sm:$0xff]  }
  0xa1   : > { %982 = vmatpush3.bf16.msra.mxu1 %v1129_v8  ;;  %v426_v21 = vld [vmem:[#allocation2] sm:$0xff] }
  0xa2   : > { %983 = vmatprep.subr.bf16.mxu1 %v1130_v9  ;;  %v489_v22 = vpack.c.bf16 %v426_v21, %v426_v21  ;;  %v945_v23 = vld [vmem:[%s1760_s3] ss:$0 sm:$0xff] }
  0xa3   : > { %v948_v32 = vld [vmem:[%s1762_s5] ss:$0 sm:$0xff] }
  0xa4   : > { %657 = vmatprep.mubr.bf16.mxu1 %v489_v22  ;;  %v1142_v46 = vld [vmem:[%s1763_s6] sm:$0xff]  }
  0xa5   : > { %984 = vmatpush3.bf16.msra.mxu1 %v1131_v10  ;;  %1011 = vmatpush3.bf16.msra.mxu0 %v1142_v46  ;;  %v966_v58 = vld [vmem:[%s1764_s7] ss:$0 sm:$0xff] }
  0xa6   : > { %985 = vmatprep.subr.bf16.mxu1 %v1132_v11  ;;  %1012 = vmatprep.subr.bf16.mxu0 %v1392_v2 }
  0xa9   : > { %986 = vmatpush3.bf16.msra.mxu1 %v1133_v12  ;;  %1013 = vmatpush3.bf16.msra.mxu0 %v1143_v48 }
  0xaa   : > { %987 = vmatprep.subr.bf16.mxu1 %v1134_v13 }
  0xad   : > { %988 = vmatpush3.bf16.msra.mxu1 %v1135_v14 }
  0xae   : > { %989 = vmatprep.subr.bf16.mxu1 %v1136_v15 }
  0xb1   : > { %990 = vmatpush3.bf16.msra.mxu1 %v1137_v16 }
  0xb2   : > { %991 = vmatprep.subr.bf16.mxu1 %v1138_v17 }
  0xb5   : > { %992 = vmatpush3.bf16.msra.mxu1 %v1139_v18 }
  0xb6   : > { %993 = vmatprep.subr.bf16.mxu1 %v1140_v19 }
  0xb9   : > { %994 = vmatpush3.bf16.msra.mxu1 %v1141_v20 }
 0x172   : > { %v481_v24 = vpop.f32.mrb[0].mxu0 }
 0x173   : > { %v482_v25 = vadd.f32 %v945_v23, %v481_v24  ;;  %v1008_v26 = vpop.f32.mrb[1].mxu0 }
 0x174   : > { %v484_v27 = vpop.f32.mrb[2].mxu0 }
 0x175   : > { %v487_v28 = vmax.f32 %v482_v25, 0.0  ;;  %v1009_v29 = vpop.f32.mrb[3].mxu0 }
 0x177   : > { %v488_v30 = vpack.c.bf16 %v487_v28, %v487_v28 }
 0x179   : > { %658 = vmatmul.mubr.bf16.vlgmr.msra.gmra.mrb[0].mxu1 %v488_v30 }
 0x24c   : > { %v995_v31 = vpop.f32.mrb[0].mxu1 }
 0x24d   : > { %v996_v33 = vpop.f32.mrb[1].mxu1 }
 0x24e   : > { %v997_v34 = vadd.f32 %v996_v33, %v995_v31  ;;  %v998_v35 = vpop.f32.mrb[2].mxu1 }
 0x24f   : > { %v999_v36 = vpop.f32.mrb[3].mxu1 }
 0x250   : > { %v660_v37 = vadd.f32 %v997_v34, %v948_v32 }
 0x252   : > { %672 = vrot.lane.b32.xlu0 %v660_v37, %s1394_s25  ;;  %v965_v38 = vmul.f32 -1.442695, %v660_v37 }
 0x254   : > { %1144 = vpow2.f32 %v965_v38 }
 0x25e   : > { %v1145_v39 = vpop.eup %1144 }
 0x25f   : > { %v668_v40 = vadd.f32 1.0, %v1145_v39 }
 0x261   : > { %1146 = vrcp.f32 %v668_v40 }
 0x26b   : > { %v1147_v41 = vpop.eup %1146 }
 0x26c   : > { %v682_v50 = vsub.f32 1.0, %v1147_v41 }
 0x2c4   : > { %v673_v42 = vpop.permute.xlu0 %672 }
 0x2c5   : > { %v675_v43 = vmul.f32 %v1147_v41, %v673_v42 }
 0x2c7   : > { %677 = vrot.lane.b32.xlu0 %v675_v43, %s1395_s15 }
 0x339   : > { %v678_v44 = vpop.permute.xlu0 %677 }
 0x33a   : > { %v680_v45 = vadd.f32 %v678_v44, %v660_v37 }
 0x33c   : > { %1148 = vtanh.f32 %v680_v45 }
 0x346   : > { %v1149_v47 = vpop.eup %1148 }
 0x347   : > { %684 = vrot.lane.b32.xlu1 %v1149_v47, %s1396_s9 }
 0x34b   : > { %689 = vrot.lane.b32.xlu1 %v426_v21, %s1394_s25 }
 0x3b9   : > { %v685_v49 = vpop.permute.xlu1 %684 }
 0x3ba   : > { %v687_v52 = vmul.f32 %v685_v49, %v682_v50 }
 0x3bd   : > { %v690_v51 = vpop.permute.xlu1 %689 }
 0x3be   : > { %v692_v53 = vmul.f32 %v1147_v41, %v690_v51 }
 0x3c0   : > { %v693_v54 = vadd.f32 %v692_v53, %v687_v52 }
 0x3c2   : > { %695 = vrot.lane.b32.xlu1 %v693_v54, %s1396_s9  ;;  %v700_v55 = vpack.c.bf16 %v693_v54, %v693_v54 }
 0x3c4   : > { %713 = vrot.lane.b32.xlu0 %v700_v55, %s1396_s9 }
 0x434   : > { %v696_v56 = vpop.permute.xlu1 %695 }
 0x435   : > { %699 = vst.msk [vmem:[#allocation2] sm:$0xff] %vm698_vm2, %v696_v56  ;;  %776 = vst.msk [vmem:[#allocation12] sm:$0xff] (!%p970_p1), %vm698_vm2, %v696_v56 }
 0x436   : > { %v714_v57 = vpop.permute.xlu0 %713 }
 0x437   : > { %1015 = vmatmul.mubr.msk.bf16.vlgmr.msra.gmra.mrb[4].mxu0 %vm698_vm2, %v714_v57 }
 0x507   : > { %775 = sbr.rel (%p970_p1) target bundleno = 1294 (0x50e), region = 76 }
 0x50a   : > { %v764_v59 = vpop.f32.mrb[4].mxu0 }
 0x50b   : > { %v765_v60 = vadd.f32 %v966_v58, %v764_v59  ;;  %v1016_v61 = vpop.f32.mrb[5].mxu0 }
 0x50c   : > { %v767_v62 = vpop.f32.mrb[6].mxu0 }
 0x50d   : > { %771 = vst.msk [vmem:[%s1663_s21] sm:$0xff] %vm770_vm3, %v765_v60  ;;  %v1017_v63 = vpop.f32.mrb[7].mxu0 }
 0x50e PF: > { %s972_s17 = sshll.u32 %s1376_s12, 7  ;;  %s1795_s20 = sld [smem:[#allocation22_spill]] }
 0x50f   : > { %s792_s15 = sshll.u32 %s1663_s21, 4  ;;  %s778_s30 = scalar_lea.sflag [#allocation5], %s1647_s1  ;;  %s793_s15 = int_to_ptr.vmem [resolvable:$true] %s792_s15 }
 0x510   : > { %s1264_s23 = scalar_lea.vmem %s793_s15, 128  ;;  %s1397_s16 = smov [#allocation11]  }
 0x511   : > { %p1265_p4 = scmp.ne.s32.totalorder %s793_s15, %s1264_s23  ;;  %s1268_s28 = sshll.u32 %s1397_s16, 4  ;;  %s1269_s28 = int_to_ptr.vmem [resolvable:$false] %s1268_s28 }
 0x512   : > { %s1270_s9 = scalar_lea.vmem %s1269_s28, 256  ;;  %p1271_p0 = scmp.lt.s32.totalorder %s793_s15, %s1269_s28 }
 0x513   : > { %p1266_p6 = pnand %p1265_p4, %p1592_p2  ;;  %p1272_p5 = scmp.lt.s32.totalorder %s1270_s9, %s1264_s23 }
 0x514   : > { %s1692_s25 = scalar_lea.hbm %s1795_s20, %s972_s17 }
 0x515   : > { %p1267_p8 = pneg %p1266_p6  ;;  %p1273_p9 = por %p1272_p5, %p1271_p0 }
 0x517   : > { %p1274_p12 = pnand %p1273_p9, %p1267_p8 }
 0x519   : > { %1277 = shalt.err (!%p1274_p12)
}
 0x51a   : > { %s1278_s12 = scalar_lea.hbm %s1692_s25, 128  ;;  %s1282_s22 = scalar_lea.hbm %s1795_s20, 1024 }
 0x51b   : > { %p1279_p11 = scmp.ne.s32.totalorder %s1692_s25, %s1278_s12  ;;  %p1283_p13 = scmp.lt.u32.totalorder %s1692_s25, %s1795_s20 }
 0x51c   : > { %p1284_p10 = scmp.lt.u32.totalorder %s1282_s22, %s1278_s12  ;;  %p1286_p4 = scmp.lt.u32.totalorder %s1278_s12, %s1692_s25 }
 0x51d   : > { %p1280_p7 = pnand %p1279_p11, %p1592_p2 }
 0x51e   : > { %p1285_p1 = por %p1284_p10, %p1283_p13 }
 0x51f   : > { %p1281_p3 = pneg %p1280_p7 }
 0x520   : > { %p1287_p6 = por %p1286_p4, %p1285_p1 }
 0x522   : > { %p1288_p8 = pnand %p1287_p6, %p1281_p3 }
 0x524   : > { %1291 = shalt.err (!%p1288_p8)
}
 0x525   : > { %1032 = dma.vmem_to_hbm [thread:$0]  (%p1592_p2), %s793_s15, 128, %s1692_s25, %s778_s30  }
 0x526   : > { %s1398_s19 = smov [#allocation12]   ;;  %p1796_p5 = scmp.ne.s32.totalorder %s1781_s18, 0 }
 0x527   : > { %s805_s29 = sshll.u32 %s1398_s19, 4  ;;  %s806_s29 = int_to_ptr.vmem [resolvable:$true] %s805_s29 }
 0x528   : > { %s1292_s23 = scalar_lea.vmem %s806_s29, 128  ;;  %p1299_p11 = scmp.lt.s32.totalorder %s806_s29, %s806_s29 }
 0x529   : > { %p1293_p0 = scmp.ne.s32.totalorder %s806_s29, %s1292_s23  ;;  %p1300_p7 = scmp.lt.s32.totalorder %s1292_s23, %s1292_s23 }
 0x52b   : > { %p1294_p9 = pnand %p1293_p0, %p1796_p5  ;;  %p1301_p13 = por %p1300_p7, %p1299_p11 }
 0x52d   : > { %p1295_p12 = pneg %p1294_p9 }
 0x52f   : > { %p1302_p10 = pnand %p1301_p13, %p1295_p12 }
 0x531   : > { %1305 = shalt.err (!%p1302_p10)
}
 0x532   : > { %s1797_s9 = sld [smem:[#allocation23_spill]] }
 0x538   : > { %s1306_s26 = scalar_lea.hbm %s1797_s9, 128 }
 0x539   : > { %p1307_p2 = scmp.ne.s32.totalorder %s1797_s9, %s1306_s26  ;;  %p1312_p4 = scmp.lt.u32.totalorder %s1306_s26, %s1797_s9 }
 0x53b   : > { %p1308_p3 = pnand %p1307_p2, %p1796_p5 }
 0x53d   : > { %p1309_p1 = pneg %p1308_p3 }
 0x53f   : > { %p1314_p6 = pnand %p1312_p4, %p1309_p1 }
 0x541   : > { %1317 = shalt.err (!%p1314_p6)
}
 0x542   : > { %1034 = dma.vmem_to_hbm [thread:$0]  (%p1796_p5), %s806_s29, 128, %s1797_s9, [#allocation13]  }
 0x543   : > { %1355 = dma.done.wait (%p1796_p5), [#allocation13], 128  }
 0x544   : > { %1357 = vsyncadd (%p1796_p5), [#allocation13], 4294967168 }
 0x545 PF: > { %s1798_s22 = sld [smem:[#allocation19_spill]]  ;;  %s1799_s27 = sld [smem:[#allocation20_spill]] }
 0x546   : > { %p1065_p8 = scmp.ge.s32.totalorder %s1384_s14, 2 }
 0x54b   : > { %s821_s17 = sand.u32 1, %s1798_s22   ;;  %p1800_p0 = scmp.ne.s32.totalorder %s1799_s27, 0 }
 0x54c   : > { %s822_s19 = scalar_lea.sflag [#allocation5], %s821_s17 }
 0x54d   : > { %p1053_p9 = pnand %p1065_p8, %p1800_p0 }
 0x54f   : > { %1359 = dma.done.wait (!%p1053_p9), %s822_s19, 128  }
 0x550   : > { %1361 = vsyncadd (!%p1053_p9), %s822_s19, 4294967168  ;;  %s29_s14 = sadd.s32 1, %s1384_s14   ;;  %s1801_s30 = smov %s1368_s10 }
 0x551   : > { %p26_p12 = scmp.ge.s32.totalorder %s29_s14, 10   ;;  %s1802_s10 = smov %s1372_s11 }
 0x552   : > { %s1803_s11 = smov %s1604_s8  ;;  %s1804_s12 = smov %s1380_s13 }
 0x553   : > { %s1805_s13 = smov %s1807_s24  ;;  %28 = sbr.rel (!%p26_p12) target bundleno = 13 (0xd), region = 127 }
 0x55a   :  { %827 = vsyncpa [#allocation4], 1 }
 0x55b   :  { %829 = vsyncpa [#allocation4 + $0x1], 1 }
 0x55c   :  { %830 = vsyncpa [#allocation7], 1 }
 0x55d   :  { %831 = vsyncpa [#allocation10], 1 }
 0x55e   :  { %832 = vsyncpa [#allocation5], 1 }
 0x55f   :  { %834 = vsyncpa [#allocation5 + $0x1], 1 }
 0x560   :  { %835 = vsyncpa [#allocation13], 1 }

</bundles_post_ra>
